<compile_context>
chip_gen: v7x
topology: tpu7x:2x2x1
jax: 0.10.0
libtpu: 0.0.40
codegen_flags: <defaults>
</compile_context>

<pallas_src>
import functools

import jax
import jax.numpy as jnp
from jax import lax
from jax.experimental import pallas as pl
from jax.experimental.pallas import tpu as pltpu


def _dsc_kernel(x_ref, dw_ref, pw_ref, o_ref, xs_ref, *, H, W):
    # x_ref : (1, Cin, H*W)            flattened image, lane-dense (VMEM)
    # dw_ref: (Cin, 9)                 depthwise 3x3 taps, kh*3+kw (VMEM, f32)
    # pw_ref: (Cout, Cin)              pointwise 1x1 weights (VMEM, f32)
    # o_ref : (1, Cout, H*W)           flattened output, lane-dense (VMEM)
    # xs_ref: (Cin, H*W + 2*(W+1))     zero-padded flat image scratch (VMEM)
    Cin = x_ref.shape[1]
    HW = x_ref.shape[2]
    Cout = o_ref.shape[1]
    PADW = xs_ref.shape[1]
    P = W + 1  # left/right pad of the flattened buffer

    x = x_ref[0]  # (Cin, HW), native dtype

    # Zero only the thin pad strips (they are never overwritten below) and
    # drop the image into the middle. Replaces the old full (Cin,TH+2,W+2)
    # halo rebuild per strip.
    xs_ref[:, :P] = jnp.zeros((Cin, P), xs_ref.dtype)
    xs_ref[:, P + HW:] = jnp.zeros((Cin, PADW - P - HW), xs_ref.dtype)
    xs_ref[:, P:P + HW] = x

    dwt = dw_ref[...]  # (Cin, 9)  f32
    pw = pw_ref[...]   # (Cout, Cin) f32

    # Column masks: in the flattened layout, horizontal taps (kw != 1) must
    # not wrap across row boundaries. Vertical out-of-image taps land in the
    # zero pads and need no mask.
    col = lax.broadcasted_iota(jnp.int32, (Cin, HW), 1) % W
    m_left = col != 0            # tap at w-1 is valid
    m_right = col != (W - 1)     # tap at w+1 is valid

    # Depthwise 3x3: nine statically shifted windows of the padded flat
    # buffer, all Cin channels processed together on full-width lanes.
    d = x * dwt[:, 4:5]          # centre tap (no shift, no mask); f32 accum
    for kh in range(3):
        for kw in range(3):
            if kh == 1 and kw == 1:
                continue
            t = kh * 3 + kw
            off = (kh - 1) * W + (kw - 1)
            shifted = xs_ref[:, P + off:P + off + HW]        # (Cin, HW)
            contrib = shifted * dwt[:, t:t + 1]              # f32
            if kw == 0:
                contrib = jnp.where(m_left, contrib, 0.0)
            elif kw == 2:
                contrib = jnp.where(m_right, contrib, 0.0)
            d = d + contrib

    # Pointwise 1x1 on the VPU (tiny Cin/Cout would leave the MXU idle).
    acc = jnp.zeros((Cout, HW), jnp.float32)
    for ci in range(Cin):
        acc = acc + d[ci:ci + 1, :] * pw[:, ci:ci + 1]

    # Single lane-dense (Cout, HW) store -> unmasked full-width vst.
    o_ref[0] = acc.astype(o_ref.dtype)


def depthwise_separable_conv(x_nchw, dw_weight, pw_weight):
    """x_nchw: (N, Cin, H, W); dw_weight: (Cin, 3, 3); pw_weight: (Cout, Cin).
    Matches nn.Conv2d(Cin, Cin, 3, 1, 1, groups=Cin, bias=False) followed by
    nn.Conv2d(Cin, Cout, 1, bias=False). Layout stays NCHW end to end (the
    H*W flatten is a free metadata reshape of the contiguous minor dims)."""
    N, Cin, H, W = x_nchw.shape
    Cout = pw_weight.shape[0]
    HW = H * W
    PADW = HW + 2 * (W + 1)

    x_flat = x_nchw.reshape(N, Cin, HW)
    dw_flat = dw_weight.reshape(Cin, 9).astype(jnp.float32)
    pw = pw_weight.astype(jnp.float32)

    itemsize = jnp.dtype(x_nchw.dtype).itemsize
    in_block = Cin * HW * itemsize
    out_block = Cout * HW * itemsize
    w_bytes = (Cin * 9 + Cout * Cin) * 4
    scratch_bytes = Cin * PADW * itemsize
    # Chip-aware cap: 48 MiB sits comfortably inside v7x's 64 MiB VMEM and is
    # orders of magnitude more than these blocks need; v5e/v6e (128 MiB) are
    # not constrained by it either.
    vmem_limit = int(min(48 * 2**20,
                         max(2 * 2**20,
                             4 * (in_block + out_block + w_bytes)
                             + 2 * scratch_bytes)))

    cost = pl.CostEstimate(
        flops=2 * N * HW * (Cin * 9 + Cin * Cout),
        transcendentals=0,
        bytes_accessed=N * (in_block + out_block) + w_bytes,
    )

    out_flat = pl.pallas_call(
        functools.partial(_dsc_kernel, H=H, W=W),
        out_shape=jax.ShapeDtypeStruct((N, Cout, HW), x_nchw.dtype),
        grid_spec=pltpu.PrefetchScalarGridSpec(
            num_scalar_prefetch=0,
            # One grid step per batch element; batch is the only (parallel)
            # grid axis, which keeps both v7x TensorCores fed at N=2 without
            # adding per-strip grid-step overhead.
            grid=(N,),
            in_specs=[
                pl.BlockSpec((1, Cin, HW), lambda b: (b, 0, 0)),
                pl.BlockSpec((Cin, 9), lambda b: (0, 0)),
                pl.BlockSpec((Cout, Cin), lambda b: (0, 0)),
            ],
            out_specs=pl.BlockSpec((1, Cout, HW), lambda b: (b, 0, 0)),
            scratch_shapes=[pltpu.VMEM((Cin, PADW), x_nchw.dtype)],
        ),
        compiler_params=pltpu.CompilerParams(
            dimension_semantics=("parallel",),
            vmem_limit_bytes=vmem_limit),
        cost_estimate=cost,
    )(x_flat, dw_flat, pw)

    return out_flat.reshape(N, Cout, H, W)


def _reference(x_nchw, dw_weight, pw_weight):
    # Pure-JAX reference (lax conv), NCHW semantics identical to torch.
    Cin = x_nchw.shape[1]
    dw = dw_weight[:, None, :, :]  # (Cin, 1, 3, 3), groups=Cin
    y = lax.conv_general_dilated(
        x_nchw, dw, window_strides=(1, 1), padding=((1, 1), (1, 1)),
        dimension_numbers=("NCHW", "OIHW", "NCHW"), feature_group_count=Cin)
    pw = pw_weight[:, :, None, None]  # (Cout, Cin, 1, 1)
    return lax.conv_general_dilated(
        y, pw, window_strides=(1, 1), padding=((0, 0), (0, 0)),
        dimension_numbers=("NCHW", "OIHW", "NCHW"))


if __name__ == "__main__":
    N, Cin, H, W = 2, 4, 16, 16
    Cout = 8

    key = jax.random.PRNGKey(0)
    kx, kd, kp = jax.random.split(key, 3)

    x = jax.random.normal(kx, (N, Cin, H, W), dtype=jnp.float32)
    # Deterministic parameter init (uniform, roughly matching torch fan-in).
    dw_bound = 1.0 / (3.0 * 3.0) ** 0.5          # depthwise: fan_in = 1*3*3
    pw_bound = 1.0 / (Cin * 1.0) ** 0.5          # pointwise: fan_in = Cin*1*1
    dw_weight = jax.random.uniform(kd, (Cin, 3, 3), jnp.float32,
                                   -dw_bound, dw_bound)
    pw_weight = jax.random.uniform(kp, (Cout, Cin), jnp.float32,
                                   -pw_bound, pw_bound)

    out = jax.block_until_ready(depthwise_separable_conv(x, dw_weight, pw_weight))
    ref = jax.block_until_ready(_reference(x, dw_weight, pw_weight))

    assert out.shape == (N, Cout, H, W)
    assert jnp.allclose(out, ref, atol=1e-4, rtol=1e-4)

    print("KERNEL_OK")
</pallas_src>

<mosaic_0001>
module attributes {stable_mosaic.version = 11 : i64} {
  func.func @_dsc_kernel(%arg0: i32, %arg1: memref<1x4x256xf32, #tpu.memory_space<vmem>>, %arg2: memref<4x9xf32, #tpu.memory_space<vmem>>, %arg3: memref<8x4xf32, #tpu.memory_space<vmem>>, %arg4: memref<1x8x256xf32, #tpu.memory_space<vmem>>, %arg5: memref<4x290xf32, #tpu.memory_space<vmem>>) attributes {dimension_semantics = [#tpu.dimension_semantics<parallel>], iteration_bounds = array<i64: 2>, scalar_prefetch = 0 : i64, scratch_operands = 1 : i64, tpu.core_type = #tpu.core_type<tc>, window_params = [{transform_indices = @transform_0, window_bounds = array<i64: 1, 4, 256>}, {pipeline_mode = #tpu.pipeline_mode<synchronous>, transform_indices = @transform_1, window_bounds = array<i64: 4, 9>}, {pipeline_mode = #tpu.pipeline_mode<synchronous>, transform_indices = @transform_2, window_bounds = array<i64: 8, 4>}, {transform_indices = @transform_3, window_bounds = array<i64: 1, 8, 256>}]} {
    %c0 = arith.constant 0 : index
    %c0_0 = arith.constant 0 : index
    %c0_1 = arith.constant 0 : index
    %0 = vector.load %arg1[%c0, %c0_0, %c0_1] : memref<1x4x256xf32, #tpu.memory_space<vmem>>, vector<1x4x256xf32>
    %1 = vector.shape_cast %0 : vector<1x4x256xf32> to vector<4x256xf32>
    %cst = arith.constant 0.000000e+00 : f32
    %2 = vector.broadcast %cst : f32 to vector<4x17xf32>
    %c0_2 = arith.constant 0 : index
    %c0_3 = arith.constant 0 : index
    %3 = vector.load %arg5[%c0_2, %c0_3] : memref<4x290xf32, #tpu.memory_space<vmem>>, vector<4x17xf32>
    tpu.vector_store %arg5[%c0_2, %c0_3], %2 {strides = array<i32>} : memref<4x290xf32, #tpu.memory_space<vmem>>, vector<4x17xf32>,
    %cst_4 = arith.constant 0.000000e+00 : f32
    %4 = vector.broadcast %cst_4 : f32 to vector<4x17xf32>
    %c0_5 = arith.constant 0 : index
    %c273 = arith.constant 273 : index
    %5 = vector.load %arg5[%c0_5, %c273] : memref<4x290xf32, #tpu.memory_space<vmem>>, vector<4x17xf32>
    tpu.vector_store %arg5[%c0_5, %c273], %4 {strides = array<i32>} : memref<4x290xf32, #tpu.memory_space<vmem>>, vector<4x17xf32>,
    %c0_6 = arith.constant 0 : index
    %c17 = arith.constant 17 : index
    %6 = vector.load %arg5[%c0_6, %c17] : memref<4x290xf32, #tpu.memory_space<vmem>>, vector<4x256xf32>
    tpu.vector_store %arg5[%c0_6, %c17], %1 {strides = array<i32>} : memref<4x290xf32, #tpu.memory_space<vmem>>, vector<4x256xf32>,
    %c0_7 = arith.constant 0 : index
    %c0_8 = arith.constant 0 : index
    %7 = vector.load %arg2[%c0_7, %c0_8] : memref<4x9xf32, #tpu.memory_space<vmem>>, vector<4x9xf32>
    %c0_9 = arith.constant 0 : index
    %c0_10 = arith.constant 0 : index
    %8 = vector.load %arg3[%c0_9, %c0_10] : memref<8x4xf32, #tpu.memory_space<vmem>>, vector<8x4xf32>
    %9 = tpu.iota {dimensions = array<i32: 1>} : vector<4x256xi32>
    %c16_i32 = arith.constant 16 : i32
    %c0_i32 = arith.constant 0 : i32
    %10 = arith.cmpi eq, %c16_i32, %c0_i32 : i32
    %c1_i32 = arith.constant 1 : i32
    %11 = arith.select %10, %c1_i32, %c16_i32 : i32
    %12 = vector.broadcast %11 : i32 to vector<4x256xi32>
    %13 = arith.remsi %9, %12 : vector<4x256xi32>
    %c0_i32_11 = arith.constant 0 : i32
    %14 = vector.broadcast %c0_i32_11 : i32 to vector<4x256xi32>
    %15 = arith.cmpi ne, %13, %14 : vector<4x256xi32>
    %c0_i32_12 = arith.constant 0 : i32
    %16 = vector.broadcast %c0_i32_12 : i32 to vector<4x256xi32>
    %17 = arith.cmpi slt, %13, %16 : vector<4x256xi32>
    %c0_i32_13 = arith.constant 0 : i32
    %18 = arith.cmpi slt, %11, %c0_i32_13 : i32
    %19 = vector.broadcast %18 : i1 to vector<4x256xi1>
    %20 = vector.broadcast %19 : vector<4x256xi1> to vector<4x256xi1>
    %21 = arith.xori %17, %20 : vector<4x256xi1>
    %22 = arith.andi %21, %15 : vector<4x256xi1>
    %23 = vector.broadcast %11 : i32 to vector<4x256xi32>
    %24 = arith.addi %13, %23 : vector<4x256xi32>
    %25 = arith.select %22, %24, %13 : vector<4x256xi1>, vector<4x256xi32>
    %c0_i32_14 = arith.constant 0 : i32
    %26 = vector.broadcast %c0_i32_14 : i32 to vector<4x256xi32>
    %27 = arith.cmpi ne, %25, %26 : vector<4x256xi32>
    %c15_i32 = arith.constant 15 : i32
    %28 = vector.broadcast %c15_i32 : i32 to vector<4x256xi32>
    %29 = arith.cmpi ne, %25, %28 : vector<4x256xi32>
    %30 = vector.extract_strided_slice %7 {offsets = [0, 4], sizes = [4, 1], strides = [1, 1]} : vector<4x9xf32> to vector<4x1xf32>
    %31 = vector.broadcast %30 : vector<4x1xf32> to vector<4x256xf32>
    %32 = arith.mulf %1, %31 : vector<4x256xf32>
    %c0_15 = arith.constant 0 : index
    %c0_16 = arith.constant 0 : index
    %33 = vector.load %arg5[%c0_15, %c0_16] : memref<4x290xf32, #tpu.memory_space<vmem>>, vector<4x256xf32>
    %34 = vector.extract_strided_slice %7 {offsets = [0, 0], sizes = [4, 1], strides = [1, 1]} : vector<4x9xf32> to vector<4x1xf32>
    %35 = vector.broadcast %34 : vector<4x1xf32> to vector<4x256xf32>
    %36 = arith.mulf %33, %35 : vector<4x256xf32>
    %cst_17 = arith.constant 0.000000e+00 : f32
    %37 = vector.broadcast %cst_17 : f32 to vector<4x256xf32>
    %38 = arith.select %27, %36, %37 : vector<4x256xi1>, vector<4x256xf32>
    %39 = arith.addf %32, %38 : vector<4x256xf32>
    %c0_18 = arith.constant 0 : index
    %c1 = arith.constant 1 : index
    %40 = vector.load %arg5[%c0_18, %c1] : memref<4x290xf32, #tpu.memory_space<vmem>>, vector<4x256xf32>
    %41 = vector.extract_strided_slice %7 {offsets = [0, 1], sizes = [4, 1], strides = [1, 1]} : vector<4x9xf32> to vector<4x1xf32>
    %42 = vector.broadcast %41 : vector<4x1xf32> to vector<4x256xf32>
    %43 = arith.mulf %40, %42 : vector<4x256xf32>
    %44 = arith.addf %39, %43 : vector<4x256xf32>
    %c0_19 = arith.constant 0 : index
    %c2 = arith.constant 2 : index
    %45 = vector.load %arg5[%c0_19, %c2] : memref<4x290xf32, #tpu.memory_space<vmem>>, vector<4x256xf32>
    %46 = vector.extract_strided_slice %7 {offsets = [0, 2], sizes = [4, 1], strides = [1, 1]} : vector<4x9xf32> to vector<4x1xf32>
    %47 = vector.broadcast %46 : vector<4x1xf32> to vector<4x256xf32>
    %48 = arith.mulf %45, %47 : vector<4x256xf32>
    %cst_20 = arith.constant 0.000000e+00 : f32
    %49 = vector.broadcast %cst_20 : f32 to vector<4x256xf32>
    %50 = arith.select %29, %48, %49 : vector<4x256xi1>, vector<4x256xf32>
    %51 = arith.addf %44, %50 : vector<4x256xf32>
    %c0_21 = arith.constant 0 : index
    %c16 = arith.constant 16 : index
    %52 = vector.load %arg5[%c0_21, %c16] : memref<4x290xf32, #tpu.memory_space<vmem>>, vector<4x256xf32>
    %53 = vector.extract_strided_slice %7 {offsets = [0, 3], sizes = [4, 1], strides = [1, 1]} : vector<4x9xf32> to vector<4x1xf32>
    %54 = vector.broadcast %53 : vector<4x1xf32> to vector<4x256xf32>
    %55 = arith.mulf %52, %54 : vector<4x256xf32>
    %cst_22 = arith.constant 0.000000e+00 : f32
    %56 = vector.broadcast %cst_22 : f32 to vector<4x256xf32>
    %57 = arith.select %27, %55, %56 : vector<4x256xi1>, vector<4x256xf32>
    %58 = arith.addf %51, %57 : vector<4x256xf32>
    %c0_23 = arith.constant 0 : index
    %c18 = arith.constant 18 : index
    %59 = vector.load %arg5[%c0_23, %c18] : memref<4x290xf32, #tpu.memory_space<vmem>>, vector<4x256xf32>
    %60 = vector.extract_strided_slice %7 {offsets = [0, 5], sizes = [4, 1], strides = [1, 1]} : vector<4x9xf32> to vector<4x1xf32>
    %61 = vector.broadcast %60 : vector<4x1xf32> to vector<4x256xf32>
    %62 = arith.mulf %59, %61 : vector<4x256xf32>
    %cst_24 = arith.constant 0.000000e+00 : f32
    %63 = vector.broadcast %cst_24 : f32 to vector<4x256xf32>
    %64 = arith.select %29, %62, %63 : vector<4x256xi1>, vector<4x256xf32>
    %65 = arith.addf %58, %64 : vector<4x256xf32>
    %c0_25 = arith.constant 0 : index
    %c32 = arith.constant 32 : index
    %66 = vector.load %arg5[%c0_25, %c32] : memref<4x290xf32, #tpu.memory_space<vmem>>, vector<4x256xf32>
    %67 = vector.extract_strided_slice %7 {offsets = [0, 6], sizes = [4, 1], strides = [1, 1]} : vector<4x9xf32> to vector<4x1xf32>
    %68 = vector.broadcast %67 : vector<4x1xf32> to vector<4x256xf32>
    %69 = arith.mulf %66, %68 : vector<4x256xf32>
    %cst_26 = arith.constant 0.000000e+00 : f32
    %70 = vector.broadcast %cst_26 : f32 to vector<4x256xf32>
    %71 = arith.select %27, %69, %70 : vector<4x256xi1>, vector<4x256xf32>
    %72 = arith.addf %65, %71 : vector<4x256xf32>
    %c0_27 = arith.constant 0 : index
    %c33 = arith.constant 33 : index
    %73 = vector.load %arg5[%c0_27, %c33] : memref<4x290xf32, #tpu.memory_space<vmem>>, vector<4x256xf32>
    %74 = vector.extract_strided_slice %7 {offsets = [0, 7], sizes = [4, 1], strides = [1, 1]} : vector<4x9xf32> to vector<4x1xf32>
    %75 = vector.broadcast %74 : vector<4x1xf32> to vector<4x256xf32>
    %76 = arith.mulf %73, %75 : vector<4x256xf32>
    %77 = arith.addf %72, %76 : vector<4x256xf32>
    %c0_28 = arith.constant 0 : index
    %c34 = arith.constant 34 : index
    %78 = vector.load %arg5[%c0_28, %c34] : memref<4x290xf32, #tpu.memory_space<vmem>>, vector<4x256xf32>
    %79 = vector.extract_strided_slice %7 {offsets = [0, 8], sizes = [4, 1], strides = [1, 1]} : vector<4x9xf32> to vector<4x1xf32>
    %80 = vector.broadcast %79 : vector<4x1xf32> to vector<4x256xf32>
    %81 = arith.mulf %78, %80 : vector<4x256xf32>
    %cst_29 = arith.constant 0.000000e+00 : f32
    %82 = vector.broadcast %cst_29 : f32 to vector<4x256xf32>
    %83 = arith.select %29, %81, %82 : vector<4x256xi1>, vector<4x256xf32>
    %84 = arith.addf %77, %83 : vector<4x256xf32>
    %cst_30 = arith.constant 0.000000e+00 : f32
    %85 = vector.broadcast %cst_30 : f32 to vector<8x256xf32>
    %86 = vector.extract_strided_slice %84 {offsets = [0, 0], sizes = [1, 256], strides = [1, 1]} : vector<4x256xf32> to vector<1x256xf32>
    %87 = vector.extract_strided_slice %8 {offsets = [0, 0], sizes = [8, 1], strides = [1, 1]} : vector<8x4xf32> to vector<8x1xf32>
    %88 = vector.broadcast %86 : vector<1x256xf32> to vector<8x256xf32>
    %89 = vector.broadcast %87 : vector<8x1xf32> to vector<8x256xf32>
    %90 = arith.mulf %88, %89 : vector<8x256xf32>
    %91 = arith.addf %85, %90 : vector<8x256xf32>
    %92 = vector.extract_strided_slice %84 {offsets = [1, 0], sizes = [1, 256], strides = [1, 1]} : vector<4x256xf32> to vector<1x256xf32>
    %93 = vector.extract_strided_slice %8 {offsets = [0, 1], sizes = [8, 1], strides = [1, 1]} : vector<8x4xf32> to vector<8x1xf32>
    %94 = vector.broadcast %92 : vector<1x256xf32> to vector<8x256xf32>
    %95 = vector.broadcast %93 : vector<8x1xf32> to vector<8x256xf32>
    %96 = arith.mulf %94, %95 : vector<8x256xf32>
    %97 = arith.addf %91, %96 : vector<8x256xf32>
    %98 = vector.extract_strided_slice %84 {offsets = [2, 0], sizes = [1, 256], strides = [1, 1]} : vector<4x256xf32> to vector<1x256xf32>
    %99 = vector.extract_strided_slice %8 {offsets = [0, 2], sizes = [8, 1], strides = [1, 1]} : vector<8x4xf32> to vector<8x1xf32>
    %100 = vector.broadcast %98 : vector<1x256xf32> to vector<8x256xf32>
    %101 = vector.broadcast %99 : vector<8x1xf32> to vector<8x256xf32>
    %102 = arith.mulf %100, %101 : vector<8x256xf32>
    %103 = arith.addf %97, %102 : vector<8x256xf32>
    %104 = vector.extract_strided_slice %84 {offsets = [3, 0], sizes = [1, 256], strides = [1, 1]} : vector<4x256xf32> to vector<1x256xf32>
    %105 = vector.extract_strided_slice %8 {offsets = [0, 3], sizes = [8, 1], strides = [1, 1]} : vector<8x4xf32> to vector<8x1xf32>
    %106 = vector.broadcast %104 : vector<1x256xf32> to vector<8x256xf32>
    %107 = vector.broadcast %105 : vector<8x1xf32> to vector<8x256xf32>
    %108 = arith.mulf %106, %107 : vector<8x256xf32>
    %109 = arith.addf %103, %108 : vector<8x256xf32>
    %c0_31 = arith.constant 0 : index
    %c0_32 = arith.constant 0 : index
    %c0_33 = arith.constant 0 : index
    %110 = vector.load %arg4[%c0_31, %c0_32, %c0_33] : memref<1x8x256xf32, #tpu.memory_space<vmem>>, vector<1x8x256xf32>
    %111 = vector.shape_cast %110 : vector<1x8x256xf32> to vector<8x256xf32>
    %112 = vector.shape_cast %109 : vector<8x256xf32> to vector<1x8x256xf32>
    tpu.vector_store %arg4[%c0_31, %c0_32, %c0_33], %112 {strides = array<i32>} : memref<1x8x256xf32, #tpu.memory_space<vmem>>, vector<1x8x256xf32>,
    return
  }
  func.func @transform_0(%arg0: i32) -> (i32, i32, i32) {
    %c0_i32 = arith.constant 0 : i32
    %c0_i32_0 = arith.constant 0 : i32
    %c0_i32_1 = arith.constant 0 : i32
    return %arg0, %c0_i32, %c0_i32_0 : i32, i32, i32
  }
  func.func @transform_1(%arg0: i32) -> (i32, i32) {
    %c0_i32 = arith.constant 0 : i32
    %c0_i32_0 = arith.constant 0 : i32
    %c0_i32_1 = arith.constant 0 : i32
    return %c0_i32, %c0_i32_0 : i32, i32
  }
  func.func @transform_2(%arg0: i32) -> (i32, i32) {
    %c0_i32 = arith.constant 0 : i32
    %c0_i32_0 = arith.constant 0 : i32
    %c0_i32_1 = arith.constant 0 : i32
    return %c0_i32, %c0_i32_0 : i32, i32
  }
  func.func @transform_3(%arg0: i32) -> (i32, i32, i32) {
    %c0_i32 = arith.constant 0 : i32
    %c0_i32_0 = arith.constant 0 : i32
    %c0_i32_1 = arith.constant 0 : i32
    return %arg0, %c0_i32, %c0_i32_0 : i32, i32, i32
  }
}

</mosaic_0001>

<bundles_post_ra>
// kernel: tpu_custom_call.1
= control target key start
LH: loop header
LB: loop body
LE: loop exit
PB: predicated region body
PF: predicated region fallthrough
CT: control target
= control target key end

     0   :  { %8 = vsyncpa [#allocation4], 0  ;;  %s1215_s0 = inlined_call_operand.hbm [shape: f32[2,4,256], index: 0, kind: input, shape index: {}]   ;;  %s1216_s1 = inlined_call_operand.vmem [shape: f32[4,9], index: 1, kind: input, shape index: {}]   ;;  %s1217_s2 = inlined_call_operand.vmem [shape: f32[8,4], index: 2, kind: input, shape index: {}]   ;;  %s1218_s3 = inlined_call_operand.hbm [shape: f32[2,8,256], index: 3, kind: output, shape index: {}]  }
   0x1   :  { %10 = vsyncpa [#allocation4 + $0x1], 0 }
   0x2   :  { %11 = vsyncpa [#allocation5], 0 }
   0x3   :  { %13 = vsyncpa [#allocation5 + $0x1], 0  ;;  %s933_s12 = smov 0   ;;  %s935_s13 = smov 0  }
   0x4   :  { %s937_s14 = smov 0   ;;  %s939_s15 = smov 0  }
   0x5 LB: > { %s954_s16 = sadd.s32 4294967295, %s890_s15   ;;  %s700_s17 = sadd.s32 4294967294, %s890_s15   ;;  %s890_s15 = sphi %s939_s15, %s1241_s15   ;;  %s886_s14 = sphi %s937_s14, %s1240_s14   ;;  %s882_s13 = sphi %s935_s13, %s1239_s13   ;;  %s878_s12 = sphi %s933_s12, %s1238_s12  }
   0x6   : > { %s958_s18 = sadd.s32 1, %s890_s15   ;;  %s26_s19 = sadd.s32 1, %s886_s14 }
   0x7   : > { %s23_s20 = ssub.s32 %s890_s15, %s958_s18  ;;  %p33_p0 = scmp.ne.s32.totalorder %s886_s14, %s882_s13 }
   0x8   : > { %p24_p1 = scmp.eq.s32.totalorder %s23_s20, 0  ;;  %p34_p2 = scmp.eq.s32.totalorder %s890_s15, 0 }
   0x9   : > { %p39_p3 = scmp.ne.s32.totalorder %s882_s13, %s878_s12  ;;  %p40_p4 = scmp.eq.s32.totalorder %s954_s16, 0 }
   0xa   : > { %s970_s21 = scalar_select %p24_p1, %s886_s14, %s26_s19  }
   0xb   : > { %p972_p5 = por %p34_p2, %p33_p0  ;;  %p976_p6 = por %p40_p4, %p39_p3 }
   0xc   : > { %p105_p7 = scmp.eq.s32.totalorder %s954_s16, 1  ;;  %p111_p8 = scmp.eq.s32.totalorder %s700_s17, 1 }
   0xd   : > { %p728_p10 = scmp.lt.s32.totalorder %s890_s15, 2  ;;  %s137_s26 = sand.u32 1, %s886_s14  }
   0xe   : > { %p983_p11 = por %p105_p7, %p33_p0  ;;  %p987_p12 = por %p111_p8, %p39_p3 }
   0xf   : > { %s714_s27 = sshll.u32 %s890_s15, 7  ;;  %s703_s28 = sshll.u32 %s137_s26, 3 }
  0x10   : > { %s1222_s24 = scalar_select %p983_p11, 1, 0 }
  0x11   : > { %s1223_s25 = scalar_select %p987_p12, 1, 0 }
  0x12   : > { %s996_s4 = scalar_lea.hbm %s1215_s0, %s714_s27  ;;  %s141_s5 = scalar_lea.vmem [#allocation3], %s703_s28 }
  0x13   : > { %s149_s6 = sshll.u32 %s141_s5, 4  ;;  %p1000_p13 = pnand %p728_p10, %p972_p5  ;;  %s1004_s6 = int_to_ptr.vmem [resolvable:$true] %s149_s6 }
  0x14   : > { %s138_s8 = scalar_lea.sflag [#allocation4], %s137_s26  ;;  %s794_s9 = scalar_lea.hbm %s996_s4, 128 }
  0x15   : > { %p795_p2 = scmp.ne.s32.totalorder %s996_s4, %s794_s9  ;;  %p796_p3 = pneg %p1000_p13 }
  0x16   : > { %s799_s17 = scalar_lea.hbm %s1215_s0, 256  ;;  %p800_p5 = scmp.lt.u32.totalorder %s996_s4, %s1215_s0 }
  0x17   : > { %p797_p4 = pnand %p796_p3, %p795_p2  ;;  %p801_p8 = scmp.lt.u32.totalorder %s799_s17, %s794_s9 }
  0x18   : > { %p803_p9 = scmp.lt.u32.totalorder %s794_s9, %s996_s4 }
  0x19   : > { %p798_p7 = pneg %p797_p4  ;;  %p802_p10 = por %p801_p8, %p800_p5 }
  0x1b   : > { %p804_p0 = por %p803_p9, %p802_p10 }
  0x1d   : > { %p805_p1 = pnand %p804_p0, %p798_p7 }
  0x1f   : > { %808 = shalt.err (!%p805_p1)
}
  0x20   : > { %s809_s22 = scalar_lea.vmem %s1004_s6, 128  ;;  %s892_s26 = smov [#allocation3]  }
  0x21   : > { %p810_p2 = scmp.ne.s32.totalorder %s1004_s6, %s809_s22  ;;  %s814_s27 = sshll.u32 %s892_s26, 4  ;;  %s815_s27 = int_to_ptr.vmem [resolvable:$false] %s814_s27 }
  0x22   : > { %s816_s28 = scalar_lea.vmem %s815_s27, 256  ;;  %p817_p11 = scmp.lt.s32.totalorder %s1004_s6, %s815_s27 }
  0x23   : > { %p812_p4 = pnand %p810_p2, %p796_p3  ;;  %p818_p5 = scmp.lt.s32.totalorder %s816_s28, %s809_s22 }
  0x25   : > { %p813_p12 = pneg %p812_p4  ;;  %p819_p8 = por %p818_p5, %p817_p11 }
  0x27   : > { %p820_p9 = pnand %p819_p8, %p813_p12 }
  0x29   : > { %823 = shalt.err (!%p820_p9)
}
  0x2a   : > { %723 = dma.hbm_to_vmem [thread:$0]  (!%p1000_p13), %s996_s4, 128, %s1004_s6, %s138_s8  }
  0x2b   : > { %p1225_p0 = scmp.lt.s32.totalorder %s890_s15, 3  ;;  %p1226_p1 = scmp.ge.s32.totalorder %s890_s15, 1 }
  0x2d   : > { %p155_p3 = pnand %p1226_p1, %p1225_p0 }
  0x2e   : > { %s1038_s29 = sand.u32 (!%p155_p3), 1, %s882_s13  }
  0x2f   : > { %158 = sbr.rel (%p155_p3) target bundleno = 384 (0x180), region = 32  ;;  %s707_s30 = sshll.u32 (!%p155_p3), %s1038_s29, 3 }
  0x30   : > { %s161_s5 = scalar_lea.sflag (!%p155_p3), [#allocation4], %s1038_s29  ;;  %s164_s9 = scalar_lea.vmem (!%p155_p3), [#allocation3], %s707_s30 }
  0x36   : > { %869 = dma.done.wait (%p976_p6), %s161_s5, 128  }
  0x37   : > { %871 = vsyncadd (%p976_p6), %s161_s5, 4294967168  ;;  %v893_v0 = vmov 2   ;;  %v894_v1 = vmov 1   ;;  %vm188_vm0 = vcmask 134144   ;;  %vm190_vm1 = vcmask 273544   ;;  %v1051_v4 = vld [vmem:[%s164_s9] sm:$0xff] }
  0x38   : > { %782 = vset.pattern.permute.xlu1 %v893_v0  ;;  %781 = vset.pattern.permute.xlu0 %v894_v1  ;;  %v895_v2 = vmov 0.0   ;;  %v205_v3 = vld [vmem:[%s1216_s1] sm:$0xf]  ;;  %s896_s23 = smov 17   ;;  %v897_v5 = vmov 3   ;;  %v898_v6 = vmov 6   ;;  %v207_v15 = vlaneseq }
  0x39   : > { %189 = vst.msk [vmem:[#allocation2] sm:$0xf] %vm188_vm0, %v895_v2  ;;  %304 = vperm.xlu1 %782, %v205_v3   ;;  %193 = vrot.lane.b32.xlu0 %v1051_v4, %s896_s23  ;;  %v899_v7 = vmov 5   ;;  %v900_v8 = vmov 0   ;;  %v901_v9 = vmov 7   ;;  %v902_v10 = vmov 8  }
  0x3a   : > { %191 = vst.msk [vmem:[#allocation2 + $0x8] sm:$0xf] %vm190_vm1, %v895_v2  ;;  %v903_v11 = vmov 4   ;;  %vm200_vm2 = vcmask 1043592   ;;  %vm201_vm3 = vcmask 1047556   ;;  %vm196_vm4 = vcmask 138240  }
  0x3b   : > { %vm202_vm5 = vmor %vm201_vm3, %vm200_vm2  ;;  %v904_v16 = vmov 839922192   ;;  %v1056_v19 = vshrl.u32 %v207_v15, 7  ;;  %v1064_v27 = vand.u32 127, %v207_v15  ;;  %s905_s7 = smov 127   ;;  %s906_s8 = smov 112  }
  0x3c   : > { %v243_v17 = vunpack.c.l.s4 %v904_v16  ;;  %s907_s10 = smov 126   ;;  %s908_s11 = smov 110   ;;  %vm297_vm8 = vcmask 1043456   ;;  %vm299_vm9 = vcmask 1039360   ;;  %vm325_vm10 = vcmask 1031168  }
  0x3d   : > { %783 = vset.pattern.permute.xlu1 %v897_v5  ;;  %277 = vperm.xlu0 %781, %v205_v3   ;;  %v1070_v34 = vadd.s32 128, %v1064_v27  ;;  %v214_v37 = vand.u32 15, %v1064_v27  ;;  %s909_s17 = smov 96   ;;  %s910_s19 = smov 95   ;;  %vm361_vm13 = vcmask 916480   ;;  %vm397_vm14 = vcmask 900096  }
  0x3e   : > { %340 = vperm.xlu1 %783, %v205_v3   ;;  %v244_v18 = vunpack.c.0.s8 %v243_v17  ;;  %s911_s20 = smov 94   ;;  %vm433_vm15 = vcmask 785408   ;;  %vm469_vm1 = vcmask 777216   ;;  %v510_v49 = vsub.s32 0, %v1056_v19  ;;  %s708_s27 = sshll.u32 %s1038_s29, 4 }
  0x3f   : > { %v221_v41 = vand.u32 15, %v1070_v34  ;;  %vm1083_vm6 = vcmp.ne.s32.totalorder %v214_v37, 0  ;;  %vm1125_vm11 = vcmp.ne.s32.totalorder %v214_v37, 15  ;;  %s715_s28 = sshll.u32 %s954_s16, 8  ;;  %s186_s30 = scalar_lea.vmem [#allocation6], %s708_s27 }
  0x40   : > { %v1059_v21 = vsub.s32 %v244_v18, %v1056_v19  ;;  %s630_s5 = sshll.u32 %s186_s30, 4  ;;  %s1171_s6 = scalar_lea.hbm %s1218_s3, %s715_s28  ;;  %s1173_s5 = int_to_ptr.vmem [resolvable:$true] %s630_s5 }
  0x41   : > { %785 = vset.pattern.permute.xlu0 %v898_v6  ;;  %vm1092_vm7 = vcmp.ne.s32.totalorder %v221_v41, 0  ;;  %vm1131_vm12 = vcmp.ne.s32.totalorder %v221_v41, 15  ;;  %s616_s23 = scalar_lea.sflag [#allocation5], %s1038_s29  ;;  %s824_s16 = scalar_lea.vmem %s1173_s5, 256 }
  0x42   : > { %784 = vset.pattern.permute.xlu1 %v899_v7  ;;  %412 = vperm.xlu0 %785, %v205_v3   ;;  %p825_p6 = scmp.ne.s32.totalorder %s1173_s5, %s824_s16  ;;  %p1235_p11 = scmp.ne.s32.totalorder %s1222_s24, 0 }
  0x43   : > { %376 = vperm.xlu1 %784, %v205_v3  }
  0x44   : > { %p826_p12 = pnand %p825_p6, %p1235_p11 }
  0x46   : > { %788 = vset.pattern.permute.xlu0 %v900_v8  ;;  %p827_p13 = pneg %p826_p12 }
  0x47   : > { %786 = vset.pattern.permute.xlu1 %v901_v9  ;;  %253 = vperm.xlu0 %788, %v205_v3  }
  0x48   : > { %448 = vperm.xlu1 %786, %v205_v3  }
  0x4c   : > { %787 = vset.pattern.permute.xlu1 %v902_v10 }
  0x4d   : > { %474 = vperm.xlu1 %787, %v205_v3  }
  0x51   : > { %789 = vset.pattern.permute.xlu1 %v903_v11 }
  0x52   : > { %240 = vperm.xlu1 %789, %v205_v3  }
  0x56   : > { %790 = vset.pattern.permute.xlu1 %v894_v1 }
  0xab   : > { %v194_v12 = vpop.permute.xlu0 %193 }
  0xac   : > { %v195_v13 = vrot.slane %v194_v12, 4 }
  0xae   : > { %v197_v14 = vsel %vm196_vm4, %v195_v13, %v194_v12  ;;  %204 = vst.msk [vmem:[#allocation2 + $0x8] sm:$0xf] %vm188_vm0, %v195_v13  ;;  %vm495_vm0 = vcmask 769024  }
  0xaf   : > { %203 = vst.msk [vmem:[#allocation2] sm:$0xff] %vm202_vm5, %v197_v14 }
  0xb5   : > { %v275_v26 = vld [vmem:[#allocation2 + $0x8] sm:$0xf] }
  0xb6   : > { %v1062_v25 = vld [vmem:[#allocation2] sm:$0xff]  ;;  %v338_v39 = vld [vmem:[#allocation2 + $0x8] sm:$0xf] }
  0xb7   : > { %v410_v56 = vld [vmem:[#allocation2 + $0x8] sm:$0xf] }
  0xb8   : > { %v305_v20 = vpop.permute.xlu1 %304  ;;  %v374_v57 = vld [vmem:[#allocation2 + $0x8] sm:$0xf] }
  0xb9   : > { %v312_v28 = vrot.slane %v305_v20, %v1059_v21  ;;  %v446_v63 = vld [vmem:[#allocation2 + $0x8] sm:$0xf] }
  0xbb   : > { %v314_v35 = vmul.f32 %v312_v28, %v1062_v25  ;;  %v315_v38 = vmul.f32 %v312_v28, %v275_v26 }
  0xbc   : > { %v278_v22 = vpop.permute.xlu0 %277 }
  0xbd   : > { %v285_v23 = vrot.slane %v278_v22, %v1059_v21  ;;  %v341_v24 = vpop.permute.xlu1 %340  ;;  %v318_v10 = vcombine.high %v314_v35, %v314_v35 }
  0xbe   : > { %v348_v31 = vrot.slane %v341_v24, %v1059_v21 }
  0xbf   : > { %v287_v29 = vmul.f32 %v285_v23, %v1062_v25  ;;  %v288_v30 = vmul.f32 %v285_v23, %v275_v26 }
  0xc0   : > { %v350_v36 = vmul.f32 %v348_v31, %v1062_v25  ;;  %v351_v42 = vmul.f32 %v348_v31, %v338_v39 }
  0xc1   : > { %293 = vrot.lane.b32.xlu0 %v288_v30, %s905_s7  ;;  %291 = vrot.lane.b32.xlu1 %v287_v29, %s905_s7  ;;  %v413_v32 = vpop.permute.xlu0 %412  ;;  %s912_s7 = smov [#allocation6]  }
  0xc2   : > { %v377_v33 = vpop.permute.xlu1 %376  ;;  %v420_v43 = vrot.slane %v413_v32, %v1059_v21  ;;  %v354_v11 = vcombine.high %v350_v36, %v350_v36 }
  0xc3   : > { %v384_v44 = vrot.slane %v377_v33, %v1059_v21 }
  0xc4   : > { %v422_v50 = vmul.f32 %v420_v43, %v1062_v25  ;;  %v423_v59 = vmul.f32 %v420_v43, %v410_v56 }
  0xc5   : > { %355 = vrot.lane.b32.xlu0 %v350_v36, %s906_s8  ;;  %319 = vrot.lane.b32.xlu1 %v314_v35, %s907_s10  ;;  %v386_v51 = vmul.f32 %v384_v44, %v1062_v25  ;;  %v387_v60 = vmul.f32 %v384_v44, %v374_v57 }
  0xc6   : > { %v254_v40 = vpop.permute.xlu0 %253  ;;  %v426_v14 = vcombine.high %v422_v50, %v422_v50 }
  0xc7   : > { %v261_v45 = vrot.slane %v254_v40, %v1059_v21  ;;  %v449_v46 = vpop.permute.xlu1 %448  ;;  %v390_v12 = vcombine.high %v386_v51, %v386_v51 }
  0xc8   : > { %v456_v61 = vrot.slane %v449_v46, %v1059_v21 }
  0xc9   : > { %v263_v48 = vmul.f32 %v1062_v25, %v261_v45  ;;  %359 = vrot.lane.b32.xlu0 %v351_v42, %s906_s8  ;;  %323 = vrot.lane.b32.xlu1 %v315_v38, %s907_s10 }
  0xca   : > { %v458_v2 = vmul.f32 %v456_v61, %v1062_v25  ;;  %v459_v3 = vmul.f32 %v456_v61, %v446_v63 }
  0xcb   : > { %v265_v52 = vcombine.high %v263_v48, %v263_v48  ;;  %v267_v53 = vsel %vm1083_vm6, %v263_v48, 0.0 }
  0xcc   : > { %v475_v54 = vpop.permute.xlu1 %474 }
  0xcd   : > { %391 = vrot.lane.b32.xlu1 %v386_v51, %s908_s11  ;;  %427 = vrot.lane.b32.xlu0 %v422_v50, %s909_s17  ;;  %v268_v55 = vsel %vm1092_vm7, %v265_v52, 0.0  ;;  %v482_v6 = vrot.slane %v475_v54, %v1059_v21 }
  0xce   : > { %v271_v58 = vcombine.low %v267_v53, %v268_v55 }
  0xcf   : > { %v484_v9 = vmul.f32 %v482_v6, %v1062_v25  ;;  %v485_v15 = vmul.f32 %v482_v6, %v446_v63 }
  0xd1   : > { %v241_v62 = vpop.permute.xlu1 %240  ;;  %395 = vrot.lane.b32.xlu1 %v387_v60, %s908_s11  ;;  %431 = vrot.lane.b32.xlu0 %v423_v59, %s909_s17  ;;  %v488_v13 = vcombine.high %v484_v9, %v484_v9 }
  0xd2   : > { %v248_v1 = vrot.slane %v241_v62, %v1059_v21 }
  0xd4   : > { %v250_v7 = vmul.f32 %v248_v1, %v1051_v4  ;;  %v206_v4 = vld [vmem:[%s1217_s2] sm:$0xff] }
  0xd5   : > { %462 = vrot.lane.b32.xlu1 %v458_v2, %s910_s19  ;;  %464 = vrot.lane.b32.xlu0 %v459_v3, %s910_s19 }
  0xd6   : > { %v273_v8 = vadd.f32 %v271_v58, %v250_v7 }
  0xd9   : > { %489 = vrot.lane.b32.xlu1 %v484_v9, %s911_s20  ;;  %321 = vrot.lane.b32.xlu0 %v318_v10, %s907_s10 }
  0xdd   : > { %357 = vrot.lane.b32.xlu1 %v354_v11, %s906_s8  ;;  %393 = vrot.lane.b32.xlu0 %v390_v12, %s908_s11  ;;  %s828_s8 = sshll.u32 %s912_s7, 4  ;;  %s829_s8 = int_to_ptr.vmem [resolvable:$false] %s828_s8 }
  0xde   : > { %s830_s10 = scalar_lea.vmem %s829_s8, 512  ;;  %p831_p7 = scmp.lt.s32.totalorder %s1173_s5, %s829_s8 }
  0xdf   : > { %p832_p10 = scmp.lt.s32.totalorder %s830_s10, %s824_s16 }
  0xe1   : > { %491 = vrot.lane.b32.xlu0 %v488_v13, %s911_s20  ;;  %429 = vrot.lane.b32.xlu1 %v426_v14, %s909_s17  ;;  %p833_p2 = por %p832_p10, %p831_p7 }
  0xe3   : > { %p834_p4 = pnand %p833_p2, %p827_p13 }
  0xe5   : > { %528 = vperm.xlu0 %788, %v206_v4   ;;  %493 = vrot.lane.b32.xlu1 %v485_v15, %s911_s20  ;;  %v514_v15 = vsub.s32 4, %v1056_v19 }
  0xe9   : > { %791 = vset.pattern.permute.xlu0 %v893_v0  ;;  %554 = vperm.xlu1 %790, %v206_v4  }
  0xea   : > { %580 = vperm.xlu0 %791, %v206_v4  }
  0xed   : > { %792 = vset.pattern.permute.xlu1 %v897_v5 }
  0xee   : > { %606 = vperm.xlu1 %792, %v206_v4   ;;  %793 = vset.pattern.permute.xlu0 %v897_v5 }
 0x133   : > { %v292_v16 = vpop.permute.xlu1 %291  ;;  %v294_v17 = vpop.permute.xlu0 %293 }
 0x134   : > { %v295_v28 = vrot.slane %v292_v16, 4  ;;  %v296_v29 = vrot.slane %v294_v17, 4  ;;  %v541_v17 = vsub.s32 5, %v1056_v19 }
 0x136   : > { %v298_v31 = vsel %vm297_vm8, %v295_v28, %v296_v29  ;;  %v589_v29 = vsub.s32 3, %v1056_v19 }
 0x137   : > { %v320_v18 = vpop.permute.xlu1 %319  ;;  %v356_v20 = vpop.permute.xlu0 %355  ;;  %v300_v33 = vsel %vm299_vm9, %v292_v16, %v298_v31  ;;  %v537_v16 = vsub.s32 1, %v1056_v19 }
 0x138   : > { %v302_v37 = vadd.f32 %v300_v33, %v273_v8 }
 0x13b   : > { %v324_v21 = vpop.permute.xlu1 %323  ;;  %v360_v22 = vpop.permute.xlu0 %359 }
 0x13f   : > { %v392_v23 = vpop.permute.xlu1 %391  ;;  %v428_v24 = vpop.permute.xlu0 %427 }
 0x143   : > { %v396_v25 = vpop.permute.xlu1 %395  ;;  %v432_v26 = vpop.permute.xlu0 %431 }
 0x147   : > { %v463_v0 = vpop.permute.xlu1 %462  ;;  %v465_v30 = vpop.permute.xlu0 %464 }
 0x148   : > { %v466_v53 = vrot.slane %v463_v0, 4  ;;  %v467_v54 = vrot.slane %v465_v30, 4 }
 0x14a   : > { %v468_v2 = vsel %vm297_vm8, %v466_v53, %v467_v54 }
 0x14b   : > { %v490_v35 = vpop.permute.xlu1 %489  ;;  %v322_v36 = vpop.permute.xlu0 %321  ;;  %v470_v11 = vsel %vm469_vm1, %v463_v0, %v468_v2  ;;  %v593_v0 = vsub.s32 7, %v1056_v19 }
 0x14c   : > { %v326_v38 = vsel %vm325_vm10, %v320_v18, %v322_v36  ;;  %v327_v39 = vsel %vm325_vm10, %v322_v36, %v324_v21  ;;  %v563_v18 = vsub.s32 2, %v1056_v19 }
 0x14d   : > { %v330_v40 = vsel %vm1125_vm11, %v326_v38, 0.0  ;;  %v331_v27 = vsel %vm1131_vm12, %v327_v39, 0.0 }
 0x14e   : > { %v334_v42 = vcombine.low %v330_v40, %v331_v27 }
 0x14f   : > { %v358_v34 = vpop.permute.xlu1 %357  ;;  %v394_v41 = vpop.permute.xlu0 %393 }
 0x150   : > { %v336_v43 = vadd.f32 %v334_v42, %v302_v37  ;;  %v362_v44 = vsel %vm361_vm13, %v356_v20, %v358_v34  ;;  %v363_v45 = vsel %vm361_vm13, %v358_v34, %v360_v22  ;;  %v398_v46 = vsel %vm397_vm14, %v392_v23, %v394_v41 }
 0x151   : > { %v366_v48 = vsel %vm1083_vm6, %v362_v44, 0.0  ;;  %v367_v50 = vsel %vm1092_vm7, %v363_v45, 0.0  ;;  %v399_v51 = vsel %vm397_vm14, %v394_v41, %v396_v25  ;;  %v402_v52 = vsel %vm1125_vm11, %v398_v46, 0.0 }
 0x152   : > { %v370_v55 = vcombine.low %v366_v48, %v367_v50  ;;  %v403_v56 = vsel %vm1131_vm12, %v399_v51, 0.0  ;;  %v567_v20 = vsub.s32 6, %v1056_v19 }
 0x153   : > { %v430_v57 = vpop.permute.xlu1 %429  ;;  %v492_v58 = vpop.permute.xlu0 %491  ;;  %v406_v60 = vcombine.low %v402_v52, %v403_v56 }
 0x154   : > { %v372_v59 = vadd.f32 %v370_v55, %v336_v43  ;;  %v434_v61 = vsel %vm433_vm15, %v428_v24, %v430_v57  ;;  %v435_v62 = vsel %vm433_vm15, %v430_v57, %v432_v26  ;;  %v496_v7 = vsel %vm495_vm0, %v490_v35, %v492_v58 }
 0x155   : > { %v438_v63 = vsel %vm1083_vm6, %v434_v61, 0.0  ;;  %v439_v1 = vsel %vm1092_vm7, %v435_v62, 0.0  ;;  %v500_v12 = vsel %vm1125_vm11, %v496_v7, 0.0 }
 0x156   : > { %v408_v3 = vadd.f32 %v406_v60, %v372_v59  ;;  %v442_v6 = vcombine.low %v438_v63, %v439_v1 }
 0x157   : > { %v494_v8 = vpop.permute.xlu1 %493 }
 0x158   : > { %v444_v9 = vadd.f32 %v442_v6, %v408_v3  ;;  %v497_v10 = vsel %vm495_vm0, %v492_v58, %v494_v8 }
 0x159   : > { %v501_v13 = vsel %vm1131_vm12, %v497_v10, 0.0 }
 0x15a   : > { %v472_v47 = vadd.f32 %v470_v11, %v444_v9  ;;  %v504_v14 = vcombine.low %v500_v12, %v501_v13 }
 0x15c   : > { %v506_v4 = vadd.f32 %v504_v14, %v472_v47 }
 0x15e   : > { %v511_v21 = vrot.slane %v506_v4, %v510_v49  ;;  %v515_v22 = vrot.slane %v506_v4, %v514_v15  ;;  %v538_v23 = vrot.slane %v506_v4, %v537_v16  ;;  %v542_v24 = vrot.slane %v506_v4, %v541_v17 }
 0x15f   : > { %v564_v26 = vrot.slane %v506_v4, %v563_v18  ;;  %v568_v28 = vrot.slane %v506_v4, %v567_v20  ;;  %v590_v38 = vrot.slane %v506_v4, %v589_v29  ;;  %v594_v39 = vrot.slane %v506_v4, %v593_v0 }
 0x160   : > { %v521_v30 = vrot.slane %v511_v21, %v510_v49  ;;  %v525_v31 = vrot.slane %v515_v22, %v510_v49  ;;  %v548_v5 = vrot.slane %v538_v23, %v537_v16  ;;  %v552_v32 = vrot.slane %v542_v24, %v537_v16 }
 0x161   : > { %v574_v35 = vrot.slane %v564_v26, %v563_v18  ;;  %v578_v36 = vrot.slane %v568_v28, %v563_v18  ;;  %v600_v45 = vrot.slane %v590_v38, %v589_v29  ;;  %v604_v46 = vrot.slane %v594_v39, %v589_v29 }
 0x164   : > { %v529_v25 = vpop.permute.xlu0 %528 }
 0x165   : > { %v531_v40 = vmul.f32 %v529_v25, %v521_v30  ;;  %v532_v27 = vmul.f32 %v529_v25, %v525_v31 }
 0x168   : > { %v555_v33 = vpop.permute.xlu1 %554 }
 0x169   : > { %v557_v37 = vmul.f32 %v555_v33, %v548_v5  ;;  %v558_v42 = vmul.f32 %v555_v33, %v552_v32  ;;  %v581_v34 = vpop.permute.xlu0 %580 }
 0x16a   : > { %v583_v41 = vmul.f32 %v581_v34, %v574_v35  ;;  %v584_v43 = vmul.f32 %v581_v34, %v578_v36 }
 0x16b   : > { %v559_v44 = vadd.f32 %v557_v37, %v531_v40  ;;  %v560_v19 = vadd.f32 %v558_v42, %v532_v27 }
 0x16d   : > { %v585_v48 = vadd.f32 %v583_v41, %v559_v44  ;;  %v586_v50 = vadd.f32 %v584_v43, %v560_v19  ;;  %v607_v51 = vpop.permute.xlu1 %606 }
 0x16e   : > { %v609_v52 = vmul.f32 %v607_v51, %v600_v45  ;;  %v610_v53 = vmul.f32 %v607_v51, %v604_v46 }
 0x170   : > { %v611_v54 = vadd.f32 %v609_v52, %v585_v48  ;;  %v612_v55 = vadd.f32 %v610_v53, %v586_v50 }
 0x172   : > { %613 = vst [vmem:[%s186_s30] sm:$0xff] %v611_v54  ;;  %614 = vst [vmem:[%s186_s30 + $0x8] sm:$0xff] %v612_v55 }
 0x173   : > { %837 = shalt.err (!%p834_p4)
}
 0x174   : > { %s838_s29 = scalar_lea.hbm %s1171_s6, 256  ;;  %s842_s19 = scalar_lea.hbm %s1218_s3, 512 }
 0x175   : > { %p839_p5 = scmp.ne.s32.totalorder %s1171_s6, %s838_s29  ;;  %p843_p0 = scmp.lt.u32.totalorder %s1171_s6, %s1218_s3 }
 0x176   : > { %p844_p1 = scmp.lt.u32.totalorder %s842_s19, %s838_s29  ;;  %p846_p6 = scmp.lt.u32.totalorder %s838_s29, %s1171_s6 }
 0x177   : > { %p840_p8 = pnand %p839_p5, %p1235_p11 }
 0x178   : > { %p845_p3 = por %p844_p1, %p843_p0 }
 0x179   : > { %p841_p9 = pneg %p840_p8 }
 0x17a   : > { %p847_p12 = por %p846_p6, %p845_p3 }
 0x17c   : > { %p848_p13 = pnand %p847_p12, %p841_p9 }
 0x17e   : > { %851 = shalt.err (!%p848_p13)
}
 0x17f   : > { %718 = dma.vmem_to_hbm [thread:$0]  (%p1235_p11), %s1173_s5, 256, %s1171_s6, %s616_s23  }
 0x180 PF: > { %s642_s26 = sand.u32 1, %s878_s12   ;;  %p1236_p7 = scmp.ne.s32.totalorder %s1223_s25, 0 }
 0x181   : > { %p1237_p10 = scmp.ge.s32.totalorder %s890_s15, 2  ;;  %s643_s27 = scalar_lea.sflag [#allocation5], %s642_s26 }
 0x183   : > { %p725_p2 = pnand %p1237_p10, %p1236_p7 }
 0x185   : > { %873 = dma.done.wait (!%p725_p2), %s643_s27, 256  }
 0x186   : > { %875 = vsyncadd (!%p725_p2), %s643_s27, 4294967040  ;;  %p16_p4 = scmp.ge.s32.totalorder %s958_s18, 4   ;;  %s1238_s12 = smov %s882_s13 }
 0x187   : > { %s1239_s13 = smov %s886_s14  ;;  %s1240_s14 = smov %s970_s21 }
 0x188   : > { %s1241_s15 = smov %s958_s18  ;;  %18 = sbr.rel (!%p16_p4) target bundleno = 5 (0x5), region = 77 }
 0x18f   :  { %648 = vsyncpa [#allocation4], 1 }
 0x190   :  { %650 = vsyncpa [#allocation4 + $0x1], 1 }
 0x191   :  { %651 = vsyncpa [#allocation5], 1 }
 0x192   :  { %653 = vsyncpa [#allocation5 + $0x1], 1 }

</bundles_post_ra>
